<compile_context>
chip_gen: v7x
topology: tpu7x:2x2x1
jax: 0.10.0
libtpu: 0.0.40
codegen_flags: <defaults>
</compile_context>

<pallas_src>
import functools

import jax
import jax.numpy as jnp
from jax.experimental import pallas as pl
from jax.experimental.pallas import tpu as pltpu

NEG_SLOPE = 0.01  # torch.nn.LeakyReLU default


def _leaky_relu(x):
    return jnp.where(x > 0, x, NEG_SLOPE * x)


def _mlp_kernel(x_ref,
                w1_ref, b1_ref,
                w2_ref, b2_ref,
                w3_ref, b3_ref,
                w4_ref, b4_ref,
                o_ref, *, scale):
    # Whole 4-layer MLP fused per row-tile.
    x = x_ref[...].astype(jnp.float32)                                    # [tm, 3]
    if scale != 1.0:
        x = x * scale

    # ---- Layer 1 (3 -> 128) on the VPU: K=3 is too narrow for the MXU. ----
    w1 = w1_ref[...]                                                      # [3, 128] f32
    h = (x[:, 0:1] * w1[0:1, :]
         + x[:, 1:2] * w1[1:2, :]
         + x[:, 2:3] * w1[2:3, :]
         + b1_ref[...])                                                   # [tm, 128] f32
    h = _leaky_relu(h)

    # ---- Layers 2-4 on the MXU: bf16 operands, f32 accumulation. ----
    h = jnp.dot(h.astype(jnp.bfloat16), w2_ref[...],
                preferred_element_type=jnp.float32)                       # [tm, 128]
    h = _leaky_relu(h + b2_ref[...])

    h = jnp.dot(h.astype(jnp.bfloat16), w3_ref[...],
                preferred_element_type=jnp.float32)                       # [tm, 128]
    h = _leaky_relu(h + b3_ref[...])

    out = jnp.dot(h.astype(jnp.bfloat16), w4_ref[...],
                  preferred_element_type=jnp.float32)                     # [tm, 5]
    out = out + b4_ref[...]

    o_ref[...] = out.astype(o_ref.dtype)


def position_encoder_forward(positions, params, *, scale=1.0, tm=1024):
    """positions: [..., 3] -> [..., 5]; matches PositionEncoder(positions * scale)."""
    (w1, b1), (w2, b2), (w3, b3), (w4, b4) = params

    lead_shape = positions.shape[:-1]
    x = positions.reshape(-1, 3)
    n = x.shape[0]

    # bf16 weights for the MXU layers (cast once, tiny); layer-1 weights & all
    # biases stay f32 (bias add / LeakyReLU run in f32 on the VPU).
    w1f = w1.astype(jnp.float32)
    b1f, b2f, b3f, b4f = (b.astype(jnp.float32) for b in (b1, b2, b3, b4))
    w2b, w3b, w4b = (w.astype(jnp.bfloat16) for w in (w2, w3, w4))

    # No wrapper-side pad: use a row tile and let Pallas clip/mask the partial
    # tail block. Cap the tile for tiny inputs (block row dim must stay /8).
    tm_eff = min(tm, max(8, ((n + 7) // 8) * 8))
    grid = (pl.cdiv(n, tm_eff),)

    full = lambda i: (0, 0)  # weights/biases: one full block, resident across the grid

    out = pl.pallas_call(
        functools.partial(_mlp_kernel, scale=float(scale)),
        out_shape=jax.ShapeDtypeStruct((n, 5), positions.dtype),
        grid_spec=pltpu.PrefetchScalarGridSpec(
            num_scalar_prefetch=0,
            grid=grid,
            in_specs=[
                pl.BlockSpec((tm_eff, 3), lambda i: (i, 0)),   # x row-tile
                pl.BlockSpec((3, 128), full),   pl.BlockSpec((1, 128), full),
                pl.BlockSpec((128, 128), full), pl.BlockSpec((1, 128), full),
                pl.BlockSpec((128, 128), full), pl.BlockSpec((1, 128), full),
                pl.BlockSpec((128, 5), full),   pl.BlockSpec((1, 5), full),
            ],
            out_specs=pl.BlockSpec((tm_eff, 5), lambda i: (i, 0)),
        ),
        compiler_params=pltpu.CompilerParams(
            dimension_semantics=("parallel",)),  # row axis sharded across TCs (v7x)
    )(x, w1f, b1f, w2b, b2f, w3b, b3f, w4b, b4f)

    return out.reshape(*lead_shape, 5)


def init_params(key, dtype=jnp.float32):
    """Deterministic synthetic init matching nn.Linear shapes (stored transposed)."""
    dims = [(3, 128), (128, 128), (128, 128), (128, 5)]
    params = []
    for i, (fan_in, fan_out) in enumerate(dims):
        kw, kb = jax.random.split(jax.random.fold_in(key, i))
        bound = 1.0 / jnp.sqrt(fan_in)
        w = jax.random.uniform(kw, (fan_in, fan_out), dtype, -bound, bound)
        b = jax.random.uniform(kb, (1, fan_out), dtype, -bound, bound)
        params.append((w, b))
    return params


def _reference(positions, params, scale):
    """Pure-JAX reference reproducing the kernel's numerics (bf16 MXU operands,
    f32 accumulation, f32 VPU layer 1 / bias / LeakyReLU)."""
    (w1, b1), (w2, b2), (w3, b3), (w4, b4) = params
    x = positions.reshape(-1, 3).astype(jnp.float32) * scale
    h = (x[:, 0:1] * w1[0:1, :] + x[:, 1:2] * w1[1:2, :] + x[:, 2:3] * w1[2:3, :] + b1)
    h = jax.nn.leaky_relu(h, NEG_SLOPE)
    h = jnp.dot(h.astype(jnp.bfloat16), w2.astype(jnp.bfloat16),
                preferred_element_type=jnp.float32)
    h = jax.nn.leaky_relu(h + b2, NEG_SLOPE)
    h = jnp.dot(h.astype(jnp.bfloat16), w3.astype(jnp.bfloat16),
                preferred_element_type=jnp.float32)
    h = jax.nn.leaky_relu(h + b3, NEG_SLOPE)
    out = jnp.dot(h.astype(jnp.bfloat16), w4.astype(jnp.bfloat16),
                  preferred_element_type=jnp.float32) + b4
    return out.reshape(*positions.shape[:-1], 5).astype(positions.dtype)


if __name__ == "__main__":
    key = jax.random.PRNGKey(0)
    pkey, xkey1, xkey2 = jax.random.split(key, 3)

    params = init_params(pkey)

    # Small example: batch of 2, 8 blob positions, each (x, y, z); module feeds
    # positions * 100 into the encoder.
    positions = jax.random.normal(xkey1, (2, 8, 3), dtype=jnp.float32)
    out = position_encoder_forward(positions, params, scale=100.0)
    out = jax.block_until_ready(out)
    ref = _reference(positions, params, 100.0)
    assert out.shape == (2, 8, 5), out.shape
    assert jnp.allclose(out, ref, rtol=5e-3, atol=1e-2), "mismatch vs reference (small)"

    # Second check: exercises multiple grid steps and the partial tail block
    # (1200 rows with tm capped at 1024 -> grid of 2 with a masked tail).
    positions_big = jax.random.normal(xkey2, (4, 300, 3), dtype=jnp.float32)
    out_big = jax.block_until_ready(
        position_encoder_forward(positions_big, params, scale=100.0))
    ref_big = _reference(positions_big, params, 100.0)
    assert out_big.shape == (4, 300, 5), out_big.shape
    assert jnp.allclose(out_big, ref_big, rtol=5e-3, atol=1e-2), "mismatch vs reference (big)"

    print("KERNEL_OK")
</pallas_src>

<mosaic_0001>
module attributes {stable_mosaic.version = 11 : i64} {
  func.func @_mlp_kernel(%arg0: i32, %arg1: memref<16x3xf32, #tpu.memory_space<vmem>>, %arg2: memref<3x128xf32, #tpu.memory_space<vmem>>, %arg3: memref<1x128xf32, #tpu.memory_space<vmem>>, %arg4: memref<128x128xbf16, #tpu.memory_space<vmem>>, %arg5: memref<1x128xf32, #tpu.memory_space<vmem>>, %arg6: memref<128x128xbf16, #tpu.memory_space<vmem>>, %arg7: memref<1x128xf32, #tpu.memory_space<vmem>>, %arg8: memref<128x5xbf16, #tpu.memory_space<vmem>>, %arg9: memref<1x5xf32, #tpu.memory_space<vmem>>, %arg10: memref<16x5xf32, #tpu.memory_space<vmem>>) attributes {dimension_semantics = [#tpu.dimension_semantics<parallel>], iteration_bounds = array<i64: 1>, scalar_prefetch = 0 : i64, scratch_operands = 0 : i64, tpu.core_type = #tpu.core_type<tc>, window_params = [{transform_indices = @transform_0, window_bounds = array<i64: 16, 3>}, {pipeline_mode = #tpu.pipeline_mode<synchronous>, transform_indices = @transform_1, window_bounds = array<i64: 3, 128>}, {pipeline_mode = #tpu.pipeline_mode<synchronous>, transform_indices = @transform_2, window_bounds = array<i64: 1, 128>}, {pipeline_mode = #tpu.pipeline_mode<synchronous>, transform_indices = @transform_3, window_bounds = array<i64: 128, 128>}, {pipeline_mode = #tpu.pipeline_mode<synchronous>, transform_indices = @transform_4, window_bounds = array<i64: 1, 128>}, {pipeline_mode = #tpu.pipeline_mode<synchronous>, transform_indices = @transform_5, window_bounds = array<i64: 128, 128>}, {pipeline_mode = #tpu.pipeline_mode<synchronous>, transform_indices = @transform_6, window_bounds = array<i64: 1, 128>}, {pipeline_mode = #tpu.pipeline_mode<synchronous>, transform_indices = @transform_7, window_bounds = array<i64: 128, 5>}, {pipeline_mode = #tpu.pipeline_mode<synchronous>, transform_indices = @transform_8, window_bounds = array<i64: 1, 5>}, {transform_indices = @transform_9, window_bounds = array<i64: 16, 5>}]} {
    %c0 = arith.constant 0 : index
    %c0_0 = arith.constant 0 : index
    %0 = vector.load %arg1[%c0, %c0_0] : memref<16x3xf32, #tpu.memory_space<vmem>>, vector<16x3xf32>
    %cst = arith.constant 1.000000e+02 : f32
    %1 = vector.broadcast %cst : f32 to vector<16x3xf32>
    %2 = arith.mulf %0, %1 : vector<16x3xf32>
    %c0_1 = arith.constant 0 : index
    %c0_2 = arith.constant 0 : index
    %3 = vector.load %arg2[%c0_1, %c0_2] : memref<3x128xf32, #tpu.memory_space<vmem>>, vector<3x128xf32>
    %4 = vector.extract_strided_slice %2 {offsets = [0, 0], sizes = [16, 1], strides = [1, 1]} : vector<16x3xf32> to vector<16x1xf32>
    %5 = vector.extract_strided_slice %3 {offsets = [0, 0], sizes = [1, 128], strides = [1, 1]} : vector<3x128xf32> to vector<1x128xf32>
    %6 = vector.broadcast %4 : vector<16x1xf32> to vector<16x128xf32>
    %7 = vector.broadcast %5 : vector<1x128xf32> to vector<16x128xf32>
    %8 = arith.mulf %6, %7 : vector<16x128xf32>
    %9 = vector.extract_strided_slice %2 {offsets = [0, 1], sizes = [16, 1], strides = [1, 1]} : vector<16x3xf32> to vector<16x1xf32>
    %10 = vector.extract_strided_slice %3 {offsets = [1, 0], sizes = [1, 128], strides = [1, 1]} : vector<3x128xf32> to vector<1x128xf32>
    %11 = vector.broadcast %9 : vector<16x1xf32> to vector<16x128xf32>
    %12 = vector.broadcast %10 : vector<1x128xf32> to vector<16x128xf32>
    %13 = arith.mulf %11, %12 : vector<16x128xf32>
    %14 = arith.addf %8, %13 : vector<16x128xf32>
    %15 = vector.extract_strided_slice %2 {offsets = [0, 2], sizes = [16, 1], strides = [1, 1]} : vector<16x3xf32> to vector<16x1xf32>
    %16 = vector.extract_strided_slice %3 {offsets = [2, 0], sizes = [1, 128], strides = [1, 1]} : vector<3x128xf32> to vector<1x128xf32>
    %17 = vector.broadcast %15 : vector<16x1xf32> to vector<16x128xf32>
    %18 = vector.broadcast %16 : vector<1x128xf32> to vector<16x128xf32>
    %19 = arith.mulf %17, %18 : vector<16x128xf32>
    %20 = arith.addf %14, %19 : vector<16x128xf32>
    %c0_3 = arith.constant 0 : index
    %c0_4 = arith.constant 0 : index
    %21 = vector.load %arg3[%c0_3, %c0_4] : memref<1x128xf32, #tpu.memory_space<vmem>>, vector<1x128xf32>
    %22 = vector.broadcast %21 : vector<1x128xf32> to vector<16x128xf32>
    %23 = arith.addf %20, %22 : vector<16x128xf32>
    %cst_5 = arith.constant 0.000000e+00 : f32
    %24 = vector.broadcast %cst_5 : f32 to vector<16x128xf32>
    %25 = arith.cmpf ogt, %23, %24 : vector<16x128xf32>
    %cst_6 = arith.constant 0.00999999977 : f32
    %26 = vector.broadcast %cst_6 : f32 to vector<16x128xf32>
    %27 = arith.mulf %26, %23 : vector<16x128xf32>
    %28 = arith.select %25, %23, %27 : vector<16x128xi1>, vector<16x128xf32>
    %29 = arith.truncf %28 : vector<16x128xf32> to vector<16x128xbf16>
    %c0_7 = arith.constant 0 : index
    %c0_8 = arith.constant 0 : index
    %30 = vector.load %arg4[%c0_7, %c0_8] : memref<128x128xbf16, #tpu.memory_space<vmem>>, vector<128x128xbf16>
    %cst_9 = arith.constant dense<0.000000e+00> : vector<16x128xf32>
    %31 = tpu.matmul %29, %30, %cst_9 {dimension_numbers = #tpu.dot_dimension_numbers<[1], [0], [0], [1], [0, 0, 1, 1], [], []>} : vector<16x128xbf16>, vector<128x128xbf16>, vector<16x128xf32> -> vector<16x128xf32>
    %c0_10 = arith.constant 0 : index
    %c0_11 = arith.constant 0 : index
    %32 = vector.load %arg5[%c0_10, %c0_11] : memref<1x128xf32, #tpu.memory_space<vmem>>, vector<1x128xf32>
    %33 = vector.broadcast %32 : vector<1x128xf32> to vector<16x128xf32>
    %34 = arith.addf %31, %33 : vector<16x128xf32>
    %cst_12 = arith.constant 0.000000e+00 : f32
    %35 = vector.broadcast %cst_12 : f32 to vector<16x128xf32>
    %36 = arith.cmpf ogt, %34, %35 : vector<16x128xf32>
    %cst_13 = arith.constant 0.00999999977 : f32
    %37 = vector.broadcast %cst_13 : f32 to vector<16x128xf32>
    %38 = arith.mulf %37, %34 : vector<16x128xf32>
    %39 = arith.select %36, %34, %38 : vector<16x128xi1>, vector<16x128xf32>
    %40 = arith.truncf %39 : vector<16x128xf32> to vector<16x128xbf16>
    %c0_14 = arith.constant 0 : index
    %c0_15 = arith.constant 0 : index
    %41 = vector.load %arg6[%c0_14, %c0_15] : memref<128x128xbf16, #tpu.memory_space<vmem>>, vector<128x128xbf16>
    %cst_16 = arith.constant dense<0.000000e+00> : vector<16x128xf32>
    %42 = tpu.matmul %40, %41, %cst_16 {dimension_numbers = #tpu.dot_dimension_numbers<[1], [0], [0], [1], [0, 0, 1, 1], [], []>} : vector<16x128xbf16>, vector<128x128xbf16>, vector<16x128xf32> -> vector<16x128xf32>
    %c0_17 = arith.constant 0 : index
    %c0_18 = arith.constant 0 : index
    %43 = vector.load %arg7[%c0_17, %c0_18] : memref<1x128xf32, #tpu.memory_space<vmem>>, vector<1x128xf32>
    %44 = vector.broadcast %43 : vector<1x128xf32> to vector<16x128xf32>
    %45 = arith.addf %42, %44 : vector<16x128xf32>
    %cst_19 = arith.constant 0.000000e+00 : f32
    %46 = vector.broadcast %cst_19 : f32 to vector<16x128xf32>
    %47 = arith.cmpf ogt, %45, %46 : vector<16x128xf32>
    %cst_20 = arith.constant 0.00999999977 : f32
    %48 = vector.broadcast %cst_20 : f32 to vector<16x128xf32>
    %49 = arith.mulf %48, %45 : vector<16x128xf32>
    %50 = arith.select %47, %45, %49 : vector<16x128xi1>, vector<16x128xf32>
    %51 = arith.truncf %50 : vector<16x128xf32> to vector<16x128xbf16>
    %c0_21 = arith.constant 0 : index
    %c0_22 = arith.constant 0 : index
    %52 = vector.load %arg8[%c0_21, %c0_22] : memref<128x5xbf16, #tpu.memory_space<vmem>>, vector<128x5xbf16>
    %cst_23 = arith.constant dense<0.000000e+00> : vector<16x5xf32>
    %53 = tpu.matmul %51, %52, %cst_23 {dimension_numbers = #tpu.dot_dimension_numbers<[1], [0], [0], [1], [0, 0, 1, 1], [], []>} : vector<16x128xbf16>, vector<128x5xbf16>, vector<16x5xf32> -> vector<16x5xf32>
    %c0_24 = arith.constant 0 : index
    %c0_25 = arith.constant 0 : index
    %54 = vector.load %arg9[%c0_24, %c0_25] : memref<1x5xf32, #tpu.memory_space<vmem>>, vector<1x5xf32>
    %55 = vector.broadcast %54 : vector<1x5xf32> to vector<16x5xf32>
    %56 = arith.addf %53, %55 : vector<16x5xf32>
    %c0_26 = arith.constant 0 : index
    %c0_27 = arith.constant 0 : index
    %57 = vector.load %arg10[%c0_26, %c0_27] : memref<16x5xf32, #tpu.memory_space<vmem>>, vector<16x5xf32>
    tpu.vector_store %arg10[%c0_26, %c0_27], %56 {strides = array<i32>} : memref<16x5xf32, #tpu.memory_space<vmem>>, vector<16x5xf32>,
    return
  }
  func.func @transform_0(%arg0: i32) -> (i32, i32) {
    %c0_i32 = arith.constant 0 : i32
    %c0_i32_0 = arith.constant 0 : i32
    return %arg0, %c0_i32 : i32, i32
  }
  func.func @transform_1(%arg0: i32) -> (i32, i32) {
    %c0_i32 = arith.constant 0 : i32
    %c0_i32_0 = arith.constant 0 : i32
    %c0_i32_1 = arith.constant 0 : i32
    return %c0_i32, %c0_i32_0 : i32, i32
  }
  func.func @transform_2(%arg0: i32) -> (i32, i32) {
    %c0_i32 = arith.constant 0 : i32
    %c0_i32_0 = arith.constant 0 : i32
    %c0_i32_1 = arith.constant 0 : i32
    return %c0_i32, %c0_i32_0 : i32, i32
  }
  func.func @transform_3(%arg0: i32) -> (i32, i32) {
    %c0_i32 = arith.constant 0 : i32
    %c0_i32_0 = arith.constant 0 : i32
    %c0_i32_1 = arith.constant 0 : i32
    return %c0_i32, %c0_i32_0 : i32, i32
  }
  func.func @transform_4(%arg0: i32) -> (i32, i32) {
    %c0_i32 = arith.constant 0 : i32
    %c0_i32_0 = arith.constant 0 : i32
    %c0_i32_1 = arith.constant 0 : i32
    return %c0_i32, %c0_i32_0 : i32, i32
  }
  func.func @transform_5(%arg0: i32) -> (i32, i32) {
    %c0_i32 = arith.constant 0 : i32
    %c0_i32_0 = arith.constant 0 : i32
    %c0_i32_1 = arith.constant 0 : i32
    return %c0_i32, %c0_i32_0 : i32, i32
  }
  func.func @transform_6(%arg0: i32) -> (i32, i32) {
    %c0_i32 = arith.constant 0 : i32
    %c0_i32_0 = arith.constant 0 : i32
    %c0_i32_1 = arith.constant 0 : i32
    return %c0_i32, %c0_i32_0 : i32, i32
  }
  func.func @transform_7(%arg0: i32) -> (i32, i32) {
    %c0_i32 = arith.constant 0 : i32
    %c0_i32_0 = arith.constant 0 : i32
    %c0_i32_1 = arith.constant 0 : i32
    return %c0_i32, %c0_i32_0 : i32, i32
  }
  func.func @transform_8(%arg0: i32) -> (i32, i32) {
    %c0_i32 = arith.constant 0 : i32
    %c0_i32_0 = arith.constant 0 : i32
    %c0_i32_1 = arith.constant 0 : i32
    return %c0_i32, %c0_i32_0 : i32, i32
  }
  func.func @transform_9(%arg0: i32) -> (i32, i32) {
    %c0_i32 = arith.constant 0 : i32
    %c0_i32_0 = arith.constant 0 : i32
    return %arg0, %c0_i32 : i32, i32
  }
}

</mosaic_0001>

<bundles_post_ra>
// kernel: tpu_custom_call.1
= control target key start
LH: loop header
LB: loop body
LE: loop exit
PB: predicated region body
PF: predicated region fallthrough
CT: control target
= control target key end

     0   :  { %14 = vsyncpa [#allocation3], 0  ;;  %s649_s30 = smov [#allocation2]   ;;  %s824_s0 = inlined_call_operand.vmem [shape: f32[16,3], index: 0, kind: input, shape index: {}]   ;;  %s825_s1 = inlined_call_operand.vmem [shape: f32[3,128], index: 1, kind: input, shape index: {}]   ;;  %s826_s2 = inlined_call_operand.vmem [shape: f32[1,128], index: 2, kind: input, shape index: {}]   ;;  %s827_s3 = inlined_call_operand.vmem [shape: bf16[128,128], index: 3, kind: input, shape index: {}]   ;;  %s828_s4 = inlined_call_operand.vmem [shape: f32[1,128], index: 4, kind: input, shape index: {}]   ;;  %s829_s5 = inlined_call_operand.hbm [shape: bf16[128,128], index: 5, kind: input, shape index: {}]   ;;  %s830_s6 = inlined_call_operand.vmem [shape: f32[1,128], index: 6, kind: input, shape index: {}]   ;;  %s831_s7 = inlined_call_operand.vmem [shape: bf16[128,5], index: 7, kind: input, shape index: {}]   ;;  %s832_s8 = inlined_call_operand.vmem [shape: f32[1,5], index: 8, kind: input, shape index: {}]   ;;  %s833_s9 = inlined_call_operand.vmem [shape: f32[16,5], index: 9, kind: output, shape index: {}]  }
   0x1   :  { %s30_s10 = sshll.u32 %s649_s30, 4  ;;  %s625_s13 = scalar_lea.hbm %s829_s5, 1024  ;;  %s31_s10 = int_to_ptr.vmem [resolvable:$true] %s30_s10 }
   0x2   :  { %p626_p0 = scmp.ne.s32.totalorder %s829_s5, %s625_s13  ;;  %p629_p1 = scmp.lt.u32.totalorder %s625_s13, %s829_s5 }
   0x4   :  { %p631_p2 = pnand %p629_p1, %p626_p0 }
   0x6   :  { %634 = shalt.err (!%p631_p2)
}
   0x7   :  { %s635_s18 = scalar_lea.vmem %s31_s10, 1024  ;;  %p640_p4 = scmp.lt.s32.totalorder %s31_s10, %s31_s10 }
   0x8   :  { %p636_p3 = scmp.ne.s32.totalorder %s31_s10, %s635_s18  ;;  %p641_p5 = scmp.lt.s32.totalorder %s635_s18, %s635_s18 }
   0xa   :  { %p642_p6 = por %p641_p5, %p640_p4 }
   0xc   :  { %p643_p7 = pnand %p642_p6, %p636_p3 }
   0xe   :  { %646 = shalt.err (!%p643_p7)
}
   0xf   :  { %s650_s19 = smov 64   ;;  %s651_s20 = smov 4  }
  0x10   :  { %36 = dma.hbm_to_vmem [thread:$0]  %s829_s5, 1024, %s31_s10, [#allocation3], %s650_s19, %s650_s19, %s651_s20  }
  0x11   :  { %647 = dma.done.wait [#allocation3], 1024  }
  0x12   :  { %648 = vsyncadd [#allocation3], 4294966272  ;;  %v652_v0 = vmov 1   ;;  %v653_v1 = vmov 0   ;;  %v654_v2 = vmov 0.0   ;;  %v47_v3 = vld [vmem:[%s824_s0] sm:$0xff]  ;;  %v62_v22 = vlaneseq }
  0x13   :  { %598 = vset.pattern.permute.xlu1 %v652_v0  ;;  %597 = vset.pattern.permute.xlu0 %v653_v1  ;;  %v48_v4 = vld [vmem:[%s824_s0 + $0x8] sm:$0xff]  ;;  %v49_v5 = vmul.f32 100.0, %v47_v3  ;;  %v601_v6 = vld [vmem:[%s827_s3] sm:$0xff]   ;;  %v603_v9 = vld [vmem:[%s827_s3 + $0x10] sm:$0xff]   ;;  %v655_v10 = vmov 2   ;;  %vm656_vm0 = vmmov 0  }
  0x14   :  { %529 = vmatprep.subr.bf16.mxu0 %v654_v2  ;;  %549 = vmatprep.subr.bf16.mxu1 %v654_v2  ;;  %v50_v7 = vmul.f32 100.0, %v48_v4  ;;  %v602_v8 = vld [vmem:[%s827_s3 + $0x8] sm:$0xff]   ;;  %v604_v11 = vld [vmem:[%s827_s3 + $0x18] sm:$0xff]   ;;  %v605_v12 = vld [vmem:[%s827_s3 + $0x20] sm:$0xff]   ;;  %v63_v23 = vshrl.u32 %v62_v22, 7  ;;  %vm466_vm7 = vcmask 39936  }
  0x15   :  { %69 = vperm.xlu1 %598, %v49_v5   ;;  %54 = vperm.xlu0 %597, %v49_v5   ;;  %v606_v13 = vld [vmem:[%s827_s3 + $0x28] sm:$0xff]   ;;  %v609_v14 = vld [vmem:[#allocation2] sm:$0xff]   ;;  %v607_v15 = vld [vmem:[%s827_s3 + $0x30] sm:$0xff]  }
  0x16   :  { %530 = vmatpush3.bf16.msra.mxu0 %v601_v6  ;;  %545 = vmatprep.mubr.msk.bf16.mxu0 %vm656_vm0, %v654_v2  ;;  %v610_v16 = vld [vmem:[#allocation2 + $0x8] sm:$0xff]   ;;  %v608_v17 = vld [vmem:[%s827_s3 + $0x38] sm:$0xff]   ;;  %v611_v18 = vld [vmem:[#allocation2 + $0x10] sm:$0xff]   ;;  %v78_v24 = vsub.s32 1, %v63_v23  ;;  %v64_v25 = vsub.s32 0, %v63_v23  ;;  %v94_v29 = vsub.s32 2, %v63_v23 }
  0x17   :  { %531 = vmatprep.subr.bf16.mxu0 %v654_v2  ;;  %565 = vmatprep.mubr.msk.bf16.mxu1 %vm656_vm0, %v654_v2  ;;  %v612_v19 = vld [vmem:[#allocation2 + $0x18] sm:$0xff]   ;;  %v613_v20 = vld [vmem:[#allocation2 + $0x20] sm:$0xff]   ;;  %v614_v21 = vld [vmem:[#allocation2 + $0x28] sm:$0xff]  }
  0x18   :  { %550 = vmatpush3.bf16.msra.mxu1 %v609_v14  ;;  %v51_v26 = vld [vmem:[%s825_s1] sm:$0x7]  ;;  %v615_v55 = vld [vmem:[#allocation2 + $0x30] sm:$0xff]   ;;  %v616_v56 = vld [vmem:[#allocation2 + $0x38] sm:$0xff]  }
  0x19   :  { %73 = vperm.xlu1 %598, %v50_v7   ;;  %59 = vperm.xlu0 %597, %v50_v7   ;;  %v79_v30 = vrot.slane %v51_v26, %v78_v24  ;;  %v65_v31 = vrot.slane %v51_v26, %v64_v25  ;;  %v95_v34 = vrot.slane %v51_v26, %v94_v29  ;;  %v474_v45 = vld [vmem:[%s826_s2] ss:$0 sm:$0xff]  ;;  %v618_v58 = vld [vmem:[%s831_s7 + $0x8] sm:$0xff]   ;;  %v619_v59 = vld [vmem:[%s831_s7 + $0x10] sm:$0xff]  }
  0x1a   :  { %532 = vmatpush3.bf16.msra.mxu0 %v602_v8  ;;  %551 = vmatprep.subr.bf16.mxu1 %v654_v2  ;;  %v617_v57 = vld [vmem:[%s831_s7] sm:$0xff]   ;;  %v620_v60 = vld [vmem:[%s831_s7 + $0x18] sm:$0xff]   ;;  %v622_v62 = vld [vmem:[%s831_s7 + $0x28] sm:$0xff]  }
  0x1b   :  { %533 = vmatprep.subr.bf16.mxu0 %v654_v2  ;;  %v621_v61 = vld [vmem:[%s831_s7 + $0x20] sm:$0xff]  }
  0x1c   :  { %552 = vmatpush3.bf16.msra.mxu1 %v610_v16  ;;  %v475_v63 = vld [vmem:[%s828_s4] ss:$0 sm:$0xff] }
  0x1d   :  { %600 = vset.pattern.permute.xlu1 %v655_v10  ;;  %599 = vset.pattern.permute.xlu0 %v655_v10  ;;  %v484_v14 = vld [vmem:[%s830_s6] ss:$0 sm:$0xff] }
  0x1e   :  { %89 = vperm.xlu1 %600, %v50_v7   ;;  %85 = vperm.xlu0 %599, %v49_v5   ;;  %v493_v25 = vld [vmem:[%s832_s8] ss:$0 sm:$0xff] }
  0x1f   :  { %534 = vmatpush3.bf16.msra.mxu0 %v603_v9  ;;  %553 = vmatprep.subr.bf16.mxu1 %v654_v2 }
  0x20   :  { %535 = vmatprep.subr.bf16.mxu0 %v654_v2  ;;  %554 = vmatpush3.bf16.msra.mxu1 %v611_v18 }
  0x21   :  { %555 = vmatprep.subr.bf16.mxu1 %v654_v2 }
  0x23   :  { %536 = vmatpush3.bf16.msra.mxu0 %v604_v11 }
  0x24   :  { %537 = vmatprep.subr.bf16.mxu0 %v654_v2  ;;  %556 = vmatpush3.bf16.msra.mxu1 %v612_v19 }
  0x25   :  { %557 = vmatprep.subr.bf16.mxu1 %v654_v2 }
  0x27   :  { %538 = vmatpush3.bf16.msra.mxu0 %v605_v12  ;;  %v623_v12 = vld [vmem:[%s831_s7 + $0x30] sm:$0xff]  }
  0x28   :  { %539 = vmatprep.subr.bf16.mxu0 %v654_v2  ;;  %558 = vmatpush3.bf16.msra.mxu1 %v613_v20 }
  0x29   :  { %559 = vmatprep.subr.bf16.mxu1 %v654_v2 }
  0x2b   :  { %540 = vmatpush3.bf16.msra.mxu0 %v606_v13  ;;  %v624_v13 = vld [vmem:[%s831_s7 + $0x38] sm:$0xff]  }
  0x2c   :  { %541 = vmatprep.subr.bf16.mxu0 %v654_v2  ;;  %560 = vmatpush3.bf16.msra.mxu1 %v614_v21 }
  0x2d   :  { %561 = vmatprep.subr.bf16.mxu1 %v654_v2 }
  0x2f   :  { %542 = vmatpush3.bf16.msra.mxu0 %v607_v15 }
  0x30   :  { %543 = vmatprep.subr.bf16.mxu0 %v654_v2  ;;  %562 = vmatpush3.bf16.msra.mxu1 %v615_v55 }
  0x31   :  { %563 = vmatprep.subr.bf16.mxu1 %v654_v2 }
  0x33   :  { %544 = vmatpush3.bf16.msra.mxu0 %v608_v17 }
  0x34   :  { %569 = vmatprep.subr.bf16.mxu0 %v654_v2  ;;  %564 = vmatpush3.bf16.msra.mxu1 %v616_v56 }
  0x94   :  { %v70_v27 = vpop.permute.xlu1 %69  ;;  %v55_v28 = vpop.permute.xlu0 %54 }
  0x95   :  { %v80_v35 = vmul.f32 %v79_v30, %v70_v27  ;;  %v66_v36 = vmul.f32 %v65_v31, %v55_v28 }
  0x97   :  { %v82_v41 = vadd.f32 %v80_v35, %v66_v36 }
  0x98   :  { %v74_v32 = vpop.permute.xlu1 %73  ;;  %v60_v33 = vpop.permute.xlu0 %59 }
  0x99   :  { %v81_v37 = vmul.f32 %v79_v30, %v74_v32  ;;  %v67_v38 = vmul.f32 %v65_v31, %v60_v33 }
  0x9b   :  { %v83_v42 = vadd.f32 %v81_v37, %v67_v38 }
  0x9d   :  { %v90_v39 = vpop.permute.xlu1 %89  ;;  %v86_v40 = vpop.permute.xlu0 %85 }
  0x9e   :  { %v97_v43 = vmul.f32 %v95_v34, %v90_v39  ;;  %v96_v44 = vmul.f32 %v95_v34, %v86_v40 }
  0xa0   :  { %v99_v46 = vadd.f32 %v97_v43, %v83_v42  ;;  %v98_v47 = vadd.f32 %v96_v44, %v82_v41 }
  0xa2   :  { %v108_v48 = vadd.f32 %v474_v45, %v99_v46  ;;  %v107_v49 = vadd.f32 %v474_v45, %v98_v47 }
  0xa4   :  { %v112_v50 = vmul.f32 0.01, %v108_v48  ;;  %v111_v51 = vmul.f32 0.01, %v107_v49  ;;  %vm109_vm1 = vcmp.gt.f32.partialorder %v107_v49, 0.0  ;;  %vm110_vm2 = vcmp.gt.f32.partialorder %v108_v48, 0.0 }
  0xa6   :  { %v113_v52 = vsel %vm109_vm1, %v107_v49, %v111_v51  ;;  %v114_v53 = vsel %vm110_vm2, %v108_v48, %v112_v50 }
  0xa7   :  { %v115_v54 = vpack.c.bf16 %v114_v53, %v113_v52 }
  0xa9   :  { %546 = vmatmul.mubr.bf16.vlgmr.msra.gmra.mrb[0].mxu0 %v115_v54 }
  0xaa   :  { %585 = vmatprep.mubr.msk.bf16.mxu0 %vm656_vm0, %v654_v2  ;;  %570 = vmatpush3.bf16.msra.mxu0 %v617_v57 }
  0xab   :  { %571 = vmatprep.subr.bf16.mxu0 %v654_v2 }
  0xae   :  { %572 = vmatpush3.bf16.msra.mxu0 %v618_v58 }
  0xaf   :  { %573 = vmatprep.subr.bf16.mxu0 %v654_v2 }
  0xb2   :  { %574 = vmatpush3.bf16.msra.mxu0 %v619_v59 }
  0xb3   :  { %575 = vmatprep.subr.bf16.mxu0 %v654_v2 }
  0xb6   :  { %576 = vmatpush3.bf16.msra.mxu0 %v620_v60 }
  0xb7   :  { %577 = vmatprep.subr.bf16.mxu0 %v654_v2 }
  0xba   :  { %578 = vmatpush3.bf16.msra.mxu0 %v621_v61 }
  0xbb   :  { %579 = vmatprep.subr.bf16.mxu0 %v654_v2 }
  0xbe   :  { %580 = vmatpush3.bf16.msra.mxu0 %v622_v62 }
  0xbf   :  { %581 = vmatprep.subr.bf16.mxu0 %v654_v2 }
  0xc2   :  { %582 = vmatpush3.bf16.msra.mxu0 %v623_v12 }
  0xc3   :  { %583 = vmatprep.subr.bf16.mxu0 %v654_v2 }
  0xc6   :  { %584 = vmatpush3.bf16.msra.mxu0 %v624_v13 }
 0x17c   :  { %v221_v0 = vpop.f32.mrb[0].mxu0 }
 0x17d   :  { %v222_v1 = vadd.f32 %v475_v63, %v221_v0  ;;  %v547_v3 = vpop.f32.mrb[1].mxu0 }
 0x17e   :  { %v224_v4 = vpop.f32.mrb[2].mxu0 }
 0x17f   :  { %v230_v5 = vmul.f32 0.01, %v222_v1  ;;  %v225_v6 = vadd.f32 %v475_v63, %v224_v4  ;;  %v548_v7 = vpop.f32.mrb[3].mxu0  ;;  %vm228_vm3 = vcmp.gt.f32.partialorder %v222_v1, 0.0 }
 0x181   :  { %vm229_vm4 = vcmp.gt.f32.partialorder %v225_v6, 0.0  ;;  %v231_v8 = vmul.f32 0.01, %v225_v6  ;;  %v232_v9 = vsel %vm228_vm3, %v222_v1, %v230_v5 }
 0x183   :  { %v233_v10 = vsel %vm229_vm4, %v225_v6, %v231_v8 }
 0x184   :  { %v234_v11 = vpack.c.bf16 %v233_v10, %v232_v9 }
 0x186   :  { %566 = vmatmul.mubr.bf16.vlgmr.msra.gmra.mrb[0].mxu1 %v234_v11 }
 0x259   :  { %v340_v15 = vpop.f32.mrb[0].mxu1 }
 0x25a   :  { %v341_v16 = vadd.f32 %v484_v14, %v340_v15  ;;  %v567_v17 = vpop.f32.mrb[1].mxu1 }
 0x25b   :  { %v343_v18 = vpop.f32.mrb[2].mxu1 }
 0x25c   :  { %v349_v19 = vmul.f32 0.01, %v341_v16  ;;  %v344_v20 = vadd.f32 %v484_v14, %v343_v18  ;;  %v568_v21 = vpop.f32.mrb[3].mxu1  ;;  %vm347_vm5 = vcmp.gt.f32.partialorder %v341_v16, 0.0 }
 0x25e   :  { %vm348_vm6 = vcmp.gt.f32.partialorder %v344_v20, 0.0  ;;  %v350_v22 = vmul.f32 0.01, %v344_v20  ;;  %v351_v2 = vsel %vm347_vm5, %v341_v16, %v349_v19 }
 0x260   :  { %v352_v23 = vsel %vm348_vm6, %v344_v20, %v350_v22 }
 0x261   :  { %v353_v24 = vpack.c.bf16 %v352_v23, %v351_v2 }
 0x263   :  { %586 = vmatmul.mubr.bf16.vlgmr.msra.gmra.mrb[4].mxu0 %v353_v24 }
 0x336   :  { %v459_v26 = vpop.f32.mrb[4].mxu0 }
 0x337   :  { %v460_v27 = vadd.f32 %v493_v25, %v459_v26  ;;  %v587_v28 = vpop.f32.mrb[5].mxu0 }
 0x338   :  { %v462_v29 = vpop.f32.mrb[6].mxu0 }
 0x339   :  { %467 = vst.msk [vmem:[%s833_s9] sm:$0xff] %vm466_vm7, %v460_v27  ;;  %v463_v30 = vadd.f32 %v493_v25, %v462_v29  ;;  %v588_v31 = vpop.f32.mrb[7].mxu0 }
 0x33b   :  { %468 = vst.msk [vmem:[%s833_s9 + $0x8] sm:$0xff] %vm466_vm7, %v463_v30 }
 0x33c   :  { %473 = vsyncpa [#allocation3], 1 }

</bundles_post_ra>
